<compile_context>
chip_gen: v7x
topology: tpu7x:2x2x1
jax: 0.10.0
libtpu: 0.0.40
codegen_flags: <defaults>
</compile_context>

<pallas_src>
import jax
import jax.numpy as jnp
from jax.experimental import pallas as pl
from jax.experimental.pallas import tpu as pltpu


def _leaky_relu(x, slope=0.2):
    return jnp.where(x > 0, x, slope * x)


def _round_up(n, m):
    return ((n + m - 1) // m) * m


def mlp_d_kernel(x_ref,
                 w0_ref, b0_ref,
                 w1_ref, b1_ref,
                 w2_ref, b2_ref,
                 w3_ref, b3_ref,
                 w4_ref, b4_ref,
                 o_ref,
                 acc_ref):
    """Fused forward: Linear(F->ndf)+LReLU, 3x(Linear(ndf->ndf)+LReLU),
    Linear(ndf->1)+Sigmoid.

    Grid = (batch tiles, K tiles over flattened features).  Layer 0 accumulates
    partial (x_tile @ w0_tile) products into acc_ref (f32); the remaining layers
    and the output run once per batch tile at the last K step.
    """
    k = pl.program_id(1)
    nk = pl.num_programs(1)

    @pl.when(k == 0)
    def _():
        acc_ref[...] = jnp.zeros_like(acc_ref)

    # Layer-0 partial product: bf16 MXU matmul, f32 accumulate.
    acc_ref[...] += jnp.dot(x_ref[...], w0_ref[...],
                            preferred_element_type=jnp.float32)

    @pl.when(k == nk - 1)
    def _():
        h = _leaky_relu(acc_ref[...] + b0_ref[...])

        def lin_lrelu(h, w_ref, b_ref):
            y = jnp.dot(h.astype(jnp.bfloat16), w_ref[...],
                        preferred_element_type=jnp.float32) + b_ref[...]
            return _leaky_relu(y)

        h = lin_lrelu(h, w1_ref, b1_ref)   # Linear(ndf->ndf) + LeakyReLU
        h = lin_lrelu(h, w2_ref, b2_ref)   # Linear(ndf->ndf) + LeakyReLU
        h = lin_lrelu(h, w3_ref, b3_ref)   # Linear(ndf->ndf) + LeakyReLU

        # Final Linear(ndf -> 1): VPU multiply + lane reduction (no N=1 MXU pass).
        y = jnp.sum(h * w4_ref[...], axis=-1, keepdims=True) + b4_ref[...]
        o_ref[...] = jax.nn.sigmoid(y)


@jax.jit
def mlp_d_forward(x, params):
    """x: any shape (B, ...); flattened to (B, F) like input.view(B, -1)."""
    b = x.shape[0]
    x2d = x.reshape(b, -1)
    f = x2d.shape[1]

    (w0, b0), (w1, b1), (w2, b2), (w3, b3), (w4, b4) = params
    ndf = w0.shape[1]

    # ---- static tiling decisions -----------------------------------------
    f_pad = _round_up(f, 128)
    tk = max(t for t in (512, 256, 128) if f_pad % t == 0)   # K tile (lane-aligned)

    b8 = _round_up(b, 8)
    if b8 >= 256:
        tb = 256                      # matches 256x256 MXU on v6e/v7x
        b_pad = _round_up(b8, tb)
    else:
        tb = b8                       # small batches: single tile
        b_pad = b8

    # ---- zero-pad + dtype plumbing (wrapper-side layout work) -------------
    x_p = jnp.zeros((b_pad, f_pad), jnp.bfloat16).at[:b, :f].set(
        x2d.astype(jnp.bfloat16))
    w0_p = jnp.zeros((f_pad, ndf), jnp.bfloat16).at[:f, :].set(
        w0.astype(jnp.bfloat16))
    w1b = w1.astype(jnp.bfloat16)
    w2b = w2.astype(jnp.bfloat16)
    w3b = w3.astype(jnp.bfloat16)
    w4_row = w4.reshape(1, ndf).astype(jnp.float32)     # (ndf,1) -> (1,ndf) row
    b4_sc = b4.reshape(1, 1).astype(jnp.float32)

    nb = b_pad // tb
    nk = f_pad // tk

    const = lambda i, k: (0, 0)   # weights/biases: fetched once, VMEM-resident

    flops = 2 * b_pad * (f_pad * ndf + 3 * ndf * ndf + ndf)
    bytes_accessed = (x_p.size * 2 + w0_p.size * 2 + 3 * ndf * ndf * 2
                      + 4 * ndf * 4 + ndf * 4 + 4 + b_pad * 4)

    out = pl.pallas_call(
        mlp_d_kernel,
        out_shape=jax.ShapeDtypeStruct((b_pad, 1), jnp.float32),
        grid_spec=pltpu.PrefetchScalarGridSpec(
            num_scalar_prefetch=0,
            grid=(nb, nk),
            in_specs=[
                pl.BlockSpec((tb, tk), lambda i, k: (i, k)),    # x tile
                pl.BlockSpec((tk, ndf), lambda i, k: (k, 0)),   # w0 K-tile
                pl.BlockSpec((1, ndf), const),                  # b0
                pl.BlockSpec((ndf, ndf), const),                # w1
                pl.BlockSpec((1, ndf), const),                  # b1
                pl.BlockSpec((ndf, ndf), const),                # w2
                pl.BlockSpec((1, ndf), const),                  # b2
                pl.BlockSpec((ndf, ndf), const),                # w3
                pl.BlockSpec((1, ndf), const),                  # b3
                pl.BlockSpec((1, ndf), const),                  # w4 (row form)
                pl.BlockSpec((1, 1), const),                    # b4
            ],
            out_specs=pl.BlockSpec((tb, 1), lambda i, k: (i, 0)),
            scratch_shapes=[pltpu.VMEM((tb, ndf), jnp.float32)],
        ),
        compiler_params=pltpu.CompilerParams(
            dimension_semantics=("parallel", "arbitrary"),
            vmem_limit_bytes=48 * 1024 * 1024,
        ),
        cost_estimate=pl.CostEstimate(
            flops=flops, transcendentals=b_pad, bytes_accessed=bytes_accessed),
    )(x_p, w0_p, b0, w1b, b1, w2b, b2, w3b, b3, w4_row, b4_sc)

    return out[:b]


def init_mlp_d_params(key, input_nc, ndf=128, n_layers=3):
    """Deterministic init mirroring torch.nn.Linear default:
    U(-1/sqrt(fan_in), 1/sqrt(fan_in)) for weight and bias.
    Weights stored as (in, out); biases as (1, out)."""
    dims = [input_nc] + [ndf] * (n_layers + 1) + [1]
    params = []
    for fan_in, fan_out in zip(dims[:-1], dims[1:]):
        key, kw, kb = jax.random.split(key, 3)
        bound = 1.0 / jnp.sqrt(jnp.float32(fan_in))
        w = jax.random.uniform(kw, (fan_in, fan_out), jnp.float32, -bound, bound)
        bvec = jax.random.uniform(kb, (1, fan_out), jnp.float32, -bound, bound)
        params.append((w, bvec))
    return params


def mlp_d_reference(x, params):
    """Pure-JAX reference mirroring the kernel's bf16-matmul / f32-accumulate math."""
    b = x.shape[0]
    h = x.reshape(b, -1).astype(jnp.float32)
    (w0, b0), (w1, b1), (w2, b2), (w3, b3), (w4, b4) = params

    def lin(h, w, bias):
        return jnp.dot(h.astype(jnp.bfloat16), w.astype(jnp.bfloat16),
                       preferred_element_type=jnp.float32) + bias

    h = _leaky_relu(lin(h, w0, b0))
    h = _leaky_relu(lin(h, w1, b1))
    h = _leaky_relu(lin(h, w2, b2))
    h = _leaky_relu(lin(h, w3, b3))
    y = jnp.sum(h * w4.reshape(1, -1), axis=-1, keepdims=True) + b4.reshape(1, 1)
    return jax.nn.sigmoid(y)


if __name__ == "__main__":
    key = jax.random.PRNGKey(0)
    kx, kp = jax.random.split(key)

    # Small shapes consistent with the module: batch=8, features 4*16*16=1024
    # (exercises the K-tiled layer-0 path with 2 K steps), hidden ndf=128.
    B, C, H, W = 8, 4, 16, 16
    input_nc = C * H * W
    ndf, n_layers = 128, 3

    x = jax.random.normal(kx, (B, C, H, W), jnp.float32)
    params = init_mlp_d_params(kp, input_nc, ndf=ndf, n_layers=n_layers)

    out = jax.block_until_ready(mlp_d_forward(x, params))
    ref = mlp_d_reference(x, params)

    assert out.shape == (B, 1), out.shape
    max_diff = float(jnp.max(jnp.abs(out - ref)))
    assert jnp.allclose(out, ref, atol=1e-2, rtol=1e-2), (
        f"mismatch vs reference: max abs diff = {max_diff}")

    print("KERNEL_OK")
</pallas_src>

<mosaic_0001>
module attributes {stable_mosaic.version = 11 : i64} {
  func.func @mlp_d_kernel(%arg0: i32, %arg1: i32, %arg2: memref<8x512xbf16, #tpu.memory_space<vmem>>, %arg3: memref<512x128xbf16, #tpu.memory_space<vmem>>, %arg4: memref<1x128xf32, #tpu.memory_space<vmem>>, %arg5: memref<128x128xbf16, #tpu.memory_space<vmem>>, %arg6: memref<1x128xf32, #tpu.memory_space<vmem>>, %arg7: memref<128x128xbf16, #tpu.memory_space<vmem>>, %arg8: memref<1x128xf32, #tpu.memory_space<vmem>>, %arg9: memref<128x128xbf16, #tpu.memory_space<vmem>>, %arg10: memref<1x128xf32, #tpu.memory_space<vmem>>, %arg11: memref<1x128xf32, #tpu.memory_space<vmem>>, %arg12: memref<1x1xf32, #tpu.memory_space<vmem>>, %arg13: memref<8x1xf32, #tpu.memory_space<vmem>>, %arg14: memref<8x128xf32, #tpu.memory_space<vmem>>) attributes {dimension_semantics = [#tpu.dimension_semantics<parallel>, #tpu.dimension_semantics<arbitrary>], iteration_bounds = array<i64: 1, 2>, scalar_prefetch = 0 : i64, scratch_operands = 1 : i64, tpu.core_type = #tpu.core_type<tc>, window_params = [{transform_indices = @transform_0, window_bounds = array<i64: 8, 512>}, {transform_indices = @transform_1, window_bounds = array<i64: 512, 128>}, {pipeline_mode = #tpu.pipeline_mode<synchronous>, transform_indices = @transform_2, window_bounds = array<i64: 1, 128>}, {pipeline_mode = #tpu.pipeline_mode<synchronous>, transform_indices = @transform_3, window_bounds = array<i64: 128, 128>}, {pipeline_mode = #tpu.pipeline_mode<synchronous>, transform_indices = @transform_4, window_bounds = array<i64: 1, 128>}, {pipeline_mode = #tpu.pipeline_mode<synchronous>, transform_indices = @transform_5, window_bounds = array<i64: 128, 128>}, {pipeline_mode = #tpu.pipeline_mode<synchronous>, transform_indices = @transform_6, window_bounds = array<i64: 1, 128>}, {pipeline_mode = #tpu.pipeline_mode<synchronous>, transform_indices = @transform_7, window_bounds = array<i64: 128, 128>}, {pipeline_mode = #tpu.pipeline_mode<synchronous>, transform_indices = @transform_8, window_bounds = array<i64: 1, 128>}, {pipeline_mode = #tpu.pipeline_mode<synchronous>, transform_indices = @transform_9, window_bounds = array<i64: 1, 128>}, {pipeline_mode = #tpu.pipeline_mode<synchronous>, transform_indices = @transform_10, window_bounds = array<i64: 1, 1>}, {transform_indices = @transform_11, window_bounds = array<i64: 8, 1>}]} {
    %c0_i32 = arith.constant 0 : i32
    %0 = arith.cmpi eq, %arg1, %c0_i32 : i32
    %1 = arith.extui %0 : i1 to i32
    %c0_i32_0 = arith.constant 0 : i32
    %2 = arith.cmpi ne, %1, %c0_i32_0 : i32
    scf.if %2 {
      %cst_9 = arith.constant 0.000000e+00 : f32
      %12 = vector.broadcast %cst_9 : f32 to vector<8x128xf32>
      %c0_10 = arith.constant 0 : index
      %c0_11 = arith.constant 0 : index
      %13 = vector.load %arg14[%c0_10, %c0_11] : memref<8x128xf32, #tpu.memory_space<vmem>>, vector<8x128xf32>
      tpu.vector_store %arg14[%c0_10, %c0_11], %12 {strides = array<i32>} : memref<8x128xf32, #tpu.memory_space<vmem>>, vector<8x128xf32>,
    } else {
    }
    %c0 = arith.constant 0 : index
    %c0_1 = arith.constant 0 : index
    %3 = vector.load %arg14[%c0, %c0_1] : memref<8x128xf32, #tpu.memory_space<vmem>>, vector<8x128xf32>
    %c0_2 = arith.constant 0 : index
    %c0_3 = arith.constant 0 : index
    %4 = vector.load %arg2[%c0_2, %c0_3] : memref<8x512xbf16, #tpu.memory_space<vmem>>, vector<8x512xbf16>
    %c0_4 = arith.constant 0 : index
    %c0_5 = arith.constant 0 : index
    %5 = vector.load %arg3[%c0_4, %c0_5] : memref<512x128xbf16, #tpu.memory_space<vmem>>, vector<512x128xbf16>
    %cst = arith.constant dense<0.000000e+00> : vector<8x128xf32>
    %6 = tpu.matmul %4, %5, %cst {dimension_numbers = #tpu.dot_dimension_numbers<[1], [0], [0], [1], [0, 0, 1, 1], [], []>} : vector<8x512xbf16>, vector<512x128xbf16>, vector<8x128xf32> -> vector<8x128xf32>
    %7 = arith.addf %3, %6 : vector<8x128xf32>
    %c0_6 = arith.constant 0 : index
    %c0_7 = arith.constant 0 : index
    %8 = vector.load %arg14[%c0_6, %c0_7] : memref<8x128xf32, #tpu.memory_space<vmem>>, vector<8x128xf32>
    tpu.vector_store %arg14[%c0_6, %c0_7], %7 {strides = array<i32>} : memref<8x128xf32, #tpu.memory_space<vmem>>, vector<8x128xf32>,
    %c1_i32 = arith.constant 1 : i32
    %9 = arith.cmpi eq, %arg1, %c1_i32 : i32
    %10 = arith.extui %9 : i1 to i32
    %c0_i32_8 = arith.constant 0 : i32
    %11 = arith.cmpi ne, %10, %c0_i32_8 : i32
    scf.if %11 {
      %c0_9 = arith.constant 0 : index
      %c0_10 = arith.constant 0 : index
      %12 = vector.load %arg14[%c0_9, %c0_10] : memref<8x128xf32, #tpu.memory_space<vmem>>, vector<8x128xf32>
      %c0_11 = arith.constant 0 : index
      %c0_12 = arith.constant 0 : index
      %13 = vector.load %arg4[%c0_11, %c0_12] : memref<1x128xf32, #tpu.memory_space<vmem>>, vector<1x128xf32>
      %14 = vector.broadcast %13 : vector<1x128xf32> to vector<8x128xf32>
      %15 = arith.addf %12, %14 : vector<8x128xf32>
      %cst_13 = arith.constant 0.000000e+00 : f32
      %16 = vector.broadcast %cst_13 : f32 to vector<8x128xf32>
      %17 = arith.cmpf ogt, %15, %16 : vector<8x128xf32>
      %cst_14 = arith.constant 2.000000e-01 : f32
      %18 = vector.broadcast %cst_14 : f32 to vector<8x128xf32>
      %19 = arith.mulf %18, %15 : vector<8x128xf32>
      %20 = arith.select %17, %15, %19 : vector<8x128xi1>, vector<8x128xf32>
      %21 = arith.truncf %20 : vector<8x128xf32> to vector<8x128xbf16>
      %c0_15 = arith.constant 0 : index
      %c0_16 = arith.constant 0 : index
      %22 = vector.load %arg5[%c0_15, %c0_16] : memref<128x128xbf16, #tpu.memory_space<vmem>>, vector<128x128xbf16>
      %cst_17 = arith.constant dense<0.000000e+00> : vector<8x128xf32>
      %23 = tpu.matmul %21, %22, %cst_17 {dimension_numbers = #tpu.dot_dimension_numbers<[1], [0], [0], [1], [0, 0, 1, 1], [], []>} : vector<8x128xbf16>, vector<128x128xbf16>, vector<8x128xf32> -> vector<8x128xf32>
      %c0_18 = arith.constant 0 : index
      %c0_19 = arith.constant 0 : index
      %24 = vector.load %arg6[%c0_18, %c0_19] : memref<1x128xf32, #tpu.memory_space<vmem>>, vector<1x128xf32>
      %25 = vector.broadcast %24 : vector<1x128xf32> to vector<8x128xf32>
      %26 = arith.addf %23, %25 : vector<8x128xf32>
      %cst_20 = arith.constant 0.000000e+00 : f32
      %27 = vector.broadcast %cst_20 : f32 to vector<8x128xf32>
      %28 = arith.cmpf ogt, %26, %27 : vector<8x128xf32>
      %cst_21 = arith.constant 2.000000e-01 : f32
      %29 = vector.broadcast %cst_21 : f32 to vector<8x128xf32>
      %30 = arith.mulf %29, %26 : vector<8x128xf32>
      %31 = arith.select %28, %26, %30 : vector<8x128xi1>, vector<8x128xf32>
      %32 = arith.truncf %31 : vector<8x128xf32> to vector<8x128xbf16>
      %c0_22 = arith.constant 0 : index
      %c0_23 = arith.constant 0 : index
      %33 = vector.load %arg7[%c0_22, %c0_23] : memref<128x128xbf16, #tpu.memory_space<vmem>>, vector<128x128xbf16>
      %cst_24 = arith.constant dense<0.000000e+00> : vector<8x128xf32>
      %34 = tpu.matmul %32, %33, %cst_24 {dimension_numbers = #tpu.dot_dimension_numbers<[1], [0], [0], [1], [0, 0, 1, 1], [], []>} : vector<8x128xbf16>, vector<128x128xbf16>, vector<8x128xf32> -> vector<8x128xf32>
      %c0_25 = arith.constant 0 : index
      %c0_26 = arith.constant 0 : index
      %35 = vector.load %arg8[%c0_25, %c0_26] : memref<1x128xf32, #tpu.memory_space<vmem>>, vector<1x128xf32>
      %36 = vector.broadcast %35 : vector<1x128xf32> to vector<8x128xf32>
      %37 = arith.addf %34, %36 : vector<8x128xf32>
      %cst_27 = arith.constant 0.000000e+00 : f32
      %38 = vector.broadcast %cst_27 : f32 to vector<8x128xf32>
      %39 = arith.cmpf ogt, %37, %38 : vector<8x128xf32>
      %cst_28 = arith.constant 2.000000e-01 : f32
      %40 = vector.broadcast %cst_28 : f32 to vector<8x128xf32>
      %41 = arith.mulf %40, %37 : vector<8x128xf32>
      %42 = arith.select %39, %37, %41 : vector<8x128xi1>, vector<8x128xf32>
      %43 = arith.truncf %42 : vector<8x128xf32> to vector<8x128xbf16>
      %c0_29 = arith.constant 0 : index
      %c0_30 = arith.constant 0 : index
      %44 = vector.load %arg9[%c0_29, %c0_30] : memref<128x128xbf16, #tpu.memory_space<vmem>>, vector<128x128xbf16>
      %cst_31 = arith.constant dense<0.000000e+00> : vector<8x128xf32>
      %45 = tpu.matmul %43, %44, %cst_31 {dimension_numbers = #tpu.dot_dimension_numbers<[1], [0], [0], [1], [0, 0, 1, 1], [], []>} : vector<8x128xbf16>, vector<128x128xbf16>, vector<8x128xf32> -> vector<8x128xf32>
      %c0_32 = arith.constant 0 : index
      %c0_33 = arith.constant 0 : index
      %46 = vector.load %arg10[%c0_32, %c0_33] : memref<1x128xf32, #tpu.memory_space<vmem>>, vector<1x128xf32>
      %47 = vector.broadcast %46 : vector<1x128xf32> to vector<8x128xf32>
      %48 = arith.addf %45, %47 : vector<8x128xf32>
      %cst_34 = arith.constant 0.000000e+00 : f32
      %49 = vector.broadcast %cst_34 : f32 to vector<8x128xf32>
      %50 = arith.cmpf ogt, %48, %49 : vector<8x128xf32>
      %cst_35 = arith.constant 2.000000e-01 : f32
      %51 = vector.broadcast %cst_35 : f32 to vector<8x128xf32>
      %52 = arith.mulf %51, %48 : vector<8x128xf32>
      %53 = arith.select %50, %48, %52 : vector<8x128xi1>, vector<8x128xf32>
      %c0_36 = arith.constant 0 : index
      %c0_37 = arith.constant 0 : index
      %54 = vector.load %arg11[%c0_36, %c0_37] : memref<1x128xf32, #tpu.memory_space<vmem>>, vector<1x128xf32>
      %55 = vector.broadcast %54 : vector<1x128xf32> to vector<8x128xf32>
      %56 = arith.mulf %53, %55 : vector<8x128xf32>
      %cst_38 = arith.constant dense<0.000000e+00> : vector<8xf32>
      %57 = vector.multi_reduction <add>, %56, %cst_38 [1] : vector<8x128xf32> to vector<8xf32>
      %58 = vector.shape_cast %57 : vector<8xf32> to vector<8x1xf32>
      %c0_39 = arith.constant 0 : index
      %c0_40 = arith.constant 0 : index
      %59 = vector.load %arg12[%c0_39, %c0_40] : memref<1x1xf32, #tpu.memory_space<vmem>>, vector<1x1xf32>
      %60 = vector.broadcast %59 : vector<1x1xf32> to vector<8x1xf32>
      %61 = arith.addf %58, %60 : vector<8x1xf32>
      %62 = arith.negf %61 : vector<8x1xf32>
      %63 = math.exp %62 : vector<8x1xf32>
      %cst_41 = arith.constant 1.000000e+00 : f32
      %64 = vector.broadcast %cst_41 : f32 to vector<8x1xf32>
      %65 = arith.addf %64, %63 : vector<8x1xf32>
      %66 = arith.divf %64, %65 : vector<8x1xf32>
      %c0_42 = arith.constant 0 : index
      %c0_43 = arith.constant 0 : index
      %67 = vector.load %arg13[%c0_42, %c0_43] : memref<8x1xf32, #tpu.memory_space<vmem>>, vector<8x1xf32>
      tpu.vector_store %arg13[%c0_42, %c0_43], %66 {strides = array<i32>} : memref<8x1xf32, #tpu.memory_space<vmem>>, vector<8x1xf32>,
    } else {
    }
    return
  }
  func.func @transform_0(%arg0: i32, %arg1: i32) -> (i32, i32) {
    %c0_i32 = arith.constant 0 : i32
    return %arg0, %arg1 : i32, i32
  }
  func.func @transform_1(%arg0: i32, %arg1: i32) -> (i32, i32) {
    %c0_i32 = arith.constant 0 : i32
    %c0_i32_0 = arith.constant 0 : i32
    return %arg1, %c0_i32 : i32, i32
  }
  func.func @transform_2(%arg0: i32, %arg1: i32) -> (i32, i32) {
    %c0_i32 = arith.constant 0 : i32
    %c0_i32_0 = arith.constant 0 : i32
    %c0_i32_1 = arith.constant 0 : i32
    return %c0_i32, %c0_i32_0 : i32, i32
  }
  func.func @transform_3(%arg0: i32, %arg1: i32) -> (i32, i32) {
    %c0_i32 = arith.constant 0 : i32
    %c0_i32_0 = arith.constant 0 : i32
    %c0_i32_1 = arith.constant 0 : i32
    return %c0_i32, %c0_i32_0 : i32, i32
  }
  func.func @transform_4(%arg0: i32, %arg1: i32) -> (i32, i32) {
    %c0_i32 = arith.constant 0 : i32
    %c0_i32_0 = arith.constant 0 : i32
    %c0_i32_1 = arith.constant 0 : i32
    return %c0_i32, %c0_i32_0 : i32, i32
  }
  func.func @transform_5(%arg0: i32, %arg1: i32) -> (i32, i32) {
    %c0_i32 = arith.constant 0 : i32
    %c0_i32_0 = arith.constant 0 : i32
    %c0_i32_1 = arith.constant 0 : i32
    return %c0_i32, %c0_i32_0 : i32, i32
  }
  func.func @transform_6(%arg0: i32, %arg1: i32) -> (i32, i32) {
    %c0_i32 = arith.constant 0 : i32
    %c0_i32_0 = arith.constant 0 : i32
    %c0_i32_1 = arith.constant 0 : i32
    return %c0_i32, %c0_i32_0 : i32, i32
  }
  func.func @transform_7(%arg0: i32, %arg1: i32) -> (i32, i32) {
    %c0_i32 = arith.constant 0 : i32
    %c0_i32_0 = arith.constant 0 : i32
    %c0_i32_1 = arith.constant 0 : i32
    return %c0_i32, %c0_i32_0 : i32, i32
  }
  func.func @transform_8(%arg0: i32, %arg1: i32) -> (i32, i32) {
    %c0_i32 = arith.constant 0 : i32
    %c0_i32_0 = arith.constant 0 : i32
    %c0_i32_1 = arith.constant 0 : i32
    return %c0_i32, %c0_i32_0 : i32, i32
  }
  func.func @transform_9(%arg0: i32, %arg1: i32) -> (i32, i32) {
    %c0_i32 = arith.constant 0 : i32
    %c0_i32_0 = arith.constant 0 : i32
    %c0_i32_1 = arith.constant 0 : i32
    return %c0_i32, %c0_i32_0 : i32, i32
  }
  func.func @transform_10(%arg0: i32, %arg1: i32) -> (i32, i32) {
    %c0_i32 = arith.constant 0 : i32
    %c0_i32_0 = arith.constant 0 : i32
    %c0_i32_1 = arith.constant 0 : i32
    return %c0_i32, %c0_i32_0 : i32, i32
  }
  func.func @transform_11(%arg0: i32, %arg1: i32) -> (i32, i32) {
    %c0_i32 = arith.constant 0 : i32
    %c0_i32_0 = arith.constant 0 : i32
    return %arg0, %c0_i32 : i32, i32
  }
}

</mosaic_0001>

<bundles_post_ra>
// kernel: mlp_d_forward.1
= control target key start
LH: loop header
LB: loop body
LE: loop exit
PB: predicated region body
PF: predicated region fallthrough
CT: control target
= control target key end

     0   :  { %s1654_s19 = smov 0   ;;  %s1656_s20 = smov 0   ;;  %s1851_s0 = inlined_call_operand.vmem [shape: bf16[8,1024], index: 0, kind: input, shape index: {}]   ;;  %s1852_s1 = inlined_call_operand.vmem [shape: bf16[1024,128], index: 1, kind: input, shape index: {}]   ;;  %s1853_s2 = inlined_call_operand.vmem [shape: f32[1,128], index: 2, kind: input, shape index: {}]   ;;  %s1854_s3 = inlined_call_operand.vmem [shape: bf16[128,128], index: 3, kind: input, shape index: {}]   ;;  %s1855_s4 = inlined_call_operand.vmem [shape: f32[1,128], index: 4, kind: input, shape index: {}]   ;;  %s1856_s5 = inlined_call_operand.vmem [shape: bf16[128,128], index: 5, kind: input, shape index: {}]   ;;  %s1857_s6 = inlined_call_operand.vmem [shape: f32[1,128], index: 6, kind: input, shape index: {}]   ;;  %s1858_s7 = inlined_call_operand.vmem [shape: bf16[128,128], index: 7, kind: input, shape index: {}]   ;;  %s1859_s8 = inlined_call_operand.vmem [shape: f32[1,128], index: 8, kind: input, shape index: {}]   ;;  %s1860_s9 = inlined_call_operand.vmem [shape: f32[1,128], index: 9, kind: input, shape index: {}]   ;;  %s1861_s10 = inlined_call_operand.<no memory space> [shape: f32[1,1], index: 10, kind: input, shape index: {}]   ;;  %s1862_s11 = inlined_call_operand.vmem [shape: f32[8,1], index: 11, kind: output, shape index: {}]  }
   0x1   :  { %v16_v0 = vstv %s1861_s10  ;;  %s1658_s21 = smov 0  }
   0x2   :  { %17 = vst [vmem:[#allocation3] sm:$0x1] %v16_v0 }
   0x3 LB: > { %s32_s10 = sadd.s32 1, %s1582_s20  ;;  %p1265_p0 = scmp.ge.s32.totalorder %s1586_s21, 1  ;;  %s1586_s21 = sphi %s1658_s21, %s23_s21   ;;  %s1582_s20 = sphi %s1656_s20, %s1864_s20   ;;  %s1578_s19 = sphi %s1654_s19, %s1863_s19  }
   0x4   : > { %p33_p1 = scmp.ge.s32.totalorder %s32_s10, 2  ;;  %p369_p2 = scmp.lt.s32.totalorder %s1586_s21, 3 }
   0x6   : > { %s1866_s10 = smov (%p33_p1, %s32_s10), 0  ;;  %p370_p3 = pnand %p1265_p0, %p369_p2 }
   0x7   : > { %s1266_s22 = sshll.u32 (!%p370_p3), %s1578_s19, 2  ;;  %s1268_s23 = sshll.u32 (!%p370_p3), %s1578_s19, 6 }
   0x8   : > { %373 = sbr.rel (%p370_p3) target bundleno = 1122 (0x462), region = 64  ;;  %p420_p4 = scmp.lt.s32.totalorder (!%p370_p3), %s1266_s22, 7 }
   0x9   : > { %p428_p5 = scmp.lt.s32.totalorder (!%p370_p3), %s1268_s23, 127  ;;  %p1270_p6 = scmp.ne.s32.totalorder (!%p370_p3), %s1578_s19, 0 }
   0xf   : > { %s1868_s22 = smov (!%p420_p4, %s1266_s22), 7  ;;  %s1870_s23 = smov (!%p428_p5, %s1268_s23), 127 }
  0x10   : > { %s1267_s24 = sshll.u32 %s1868_s22, 2  ;;  %s1269_s28 = sshll.u32 %s1870_s23, 2  ;;  %v1588_v1 = vmov (!%p1270_p6), 0.0  }
  0x11   : > { %s1679_s27 = scalar_lea.vmem %s1851_s0, %s1267_s24  ;;  %s1684_s12 = scalar_lea.vmem %s1852_s1, %s1269_s28  ;;  %442 = vst [vmem:[#allocation2] sm:$0xff] (!%p1270_p6), %v1588_v1 }
  0x12   : > { %441 = sbr.rel (%p1270_p6) target bundleno = 25 (0x19), region = 68 }
  0x19 PF: > { %v1500_v2 = vld [vmem:[%s1684_s12 + $0x40] sm:$0xff]   ;;  %v1504_v6 = vld [vmem:[%s1684_s12 + $0x48] sm:$0xff]   ;;  %v1508_v10 = vld [vmem:[%s1684_s12 + $0x50] sm:$0xff]   ;;  %p1307_p7 = scmp.ne.s32.totalorder %s1578_s19, 1 }
  0x1a   : > { %v1501_v3 = vld [vmem:[%s1684_s12 + $0xc0] sm:$0xff]   ;;  %1342 = vmatprep.subr.bf16.mxu0 %v1500_v2  ;;  %v1505_v7 = vld [vmem:[%s1684_s12 + $0xc8] sm:$0xff]   ;;  %v1509_v11 = vld [vmem:[%s1684_s12 + $0xd0] sm:$0xff]   ;;  %v1589_v54 = vmov (!%p1307_p7), 0.0   ;;  %vm1590_vm0 = vmmov (!%p1307_p7), 0   ;;  %vm1183_vm5 = vcmask (!%p1307_p7), 7168  }
  0x1b   : > { %v1502_v4 = vld [vmem:[%s1684_s12] sm:$0xff]   ;;  %1364 = vmatprep.subr.bf16.mxu1 %v1501_v3  ;;  %v1506_v8 = vld [vmem:[%s1684_s12 + $0x8] sm:$0xff]   ;;  %v1510_v12 = vld [vmem:[%s1684_s12 + $0x10] sm:$0xff]  }
  0x1c   : > { %v1503_v5 = vld [vmem:[%s1684_s12 + $0x80] sm:$0xff]   ;;  %1343 = vmatpush3.bf16.msra.mxu0 %v1502_v4  ;;  %v1507_v9 = vld [vmem:[%s1684_s12 + $0x88] sm:$0xff]   ;;  %v1511_v13 = vld [vmem:[%s1684_s12 + $0x90] sm:$0xff]  }
  0x1d   : > { %1365 = vmatpush3.bf16.msra.mxu1 %v1503_v5  ;;  %1344 = vmatprep.subr.bf16.mxu0 %v1504_v6  ;;  %v1512_v14 = vld [vmem:[%s1684_s12 + $0x58] sm:$0xff]   ;;  %v1516_v18 = vld [vmem:[%s1684_s12 + $0x60] sm:$0xff]   ;;  %v1520_v22 = vld [vmem:[%s1684_s12 + $0x68] sm:$0xff]  }
  0x1e   : > { %1366 = vmatprep.subr.bf16.mxu1 %v1505_v7  ;;  %v1513_v15 = vld [vmem:[%s1684_s12 + $0xd8] sm:$0xff]   ;;  %v1517_v19 = vld [vmem:[%s1684_s12 + $0xe0] sm:$0xff]   ;;  %v1521_v23 = vld [vmem:[%s1684_s12 + $0xe8] sm:$0xff]  }
  0x1f   : > { %v1514_v16 = vld [vmem:[%s1684_s12 + $0x18] sm:$0xff]   ;;  %v1518_v20 = vld [vmem:[%s1684_s12 + $0x20] sm:$0xff]   ;;  %v1522_v24 = vld [vmem:[%s1684_s12 + $0x28] sm:$0xff]  }
  0x20   : > { %1345 = vmatpush3.bf16.msra.mxu0 %v1506_v8  ;;  %v1515_v17 = vld [vmem:[%s1684_s12 + $0x98] sm:$0xff]   ;;  %v1519_v21 = vld [vmem:[%s1684_s12 + $0xa0] sm:$0xff]   ;;  %v1523_v25 = vld [vmem:[%s1684_s12 + $0xa8] sm:$0xff]  }
  0x21   : > { %1367 = vmatpush3.bf16.msra.mxu1 %v1507_v9  ;;  %1346 = vmatprep.subr.bf16.mxu0 %v1508_v10  ;;  %v1524_v26 = vld [vmem:[%s1684_s12 + $0x70] sm:$0xff]   ;;  %v1528_v30 = vld [vmem:[%s1684_s12 + $0x78] sm:$0xff]   ;;  %v444_v34 = vld [vmem:[%s1679_s27] sm:$0xff] }
  0x22   : > { %1368 = vmatprep.subr.bf16.mxu1 %v1509_v11  ;;  %v1525_v27 = vld [vmem:[%s1684_s12 + $0xf0] sm:$0xff]   ;;  %v1529_v31 = vld [vmem:[%s1684_s12 + $0xf8] sm:$0xff]   ;;  %v445_v35 = vld [vmem:[%s1679_s27 + $0x8] sm:$0xff]  ;;  %v1271_v36 = vcombine.low %v444_v34, %v444_v34  ;;  %v1272_v37 = vcombine.high %v444_v34, %v444_v34 }
  0x23   : > { %v1526_v28 = vld [vmem:[%s1684_s12 + $0x30] sm:$0xff]   ;;  %v1530_v32 = vld [vmem:[%s1684_s12 + $0x38] sm:$0xff]   ;;  %v1273_v38 = vcombine.low %v445_v35, %v445_v35  ;;  %v1274_v39 = vcombine.high %v445_v35, %v445_v35  ;;  %v443_v48 = vld [vmem:[#allocation2] sm:$0xff] }
  0x24   : > { %1347 = vmatpush3.bf16.msra.mxu0 %v1510_v12  ;;  %v1527_v29 = vld [vmem:[%s1684_s12 + $0xb0] sm:$0xff]   ;;  %v1531_v33 = vld [vmem:[%s1684_s12 + $0xb8] sm:$0xff]   ;;  %748 = vmatprep.mubr.bf16.mxu0 %v1272_v37  ;;  %v1536_v53 = vld [vmem:[%s1854_s3] sm:$0xff] (!%p1307_p7)  }
  0x25   : > { %1369 = vmatpush3.bf16.msra.mxu1 %v1511_v13  ;;  %1348 = vmatprep.subr.bf16.mxu0 %v1512_v14  ;;  %v1537_v55 = vld [vmem:[%s1854_s3 + $0x8] sm:$0xff] (!%p1307_p7)   ;;  %v1538_v56 = vld [vmem:[%s1854_s3 + $0x10] sm:$0xff] (!%p1307_p7)   ;;  %v1544_v57 = vld [vmem:[%s1856_s5] sm:$0xff] (!%p1307_p7)  }
  0x26   : > { %1370 = vmatprep.subr.bf16.mxu1 %v1513_v15  ;;  %788 = vmatprep.mubr.bf16.mxu1 %v1274_v39  ;;  %v1539_v58 = vld [vmem:[%s1854_s3 + $0x18] sm:$0xff] (!%p1307_p7)   ;;  %v1545_v59 = vld [vmem:[%s1856_s5 + $0x8] sm:$0xff] (!%p1307_p7)   ;;  %v1540_v60 = vld [vmem:[%s1854_s3 + $0x20] sm:$0xff] (!%p1307_p7)  }
  0x27   : > { %v1308_v62 = vld [vmem:[%s1853_s2] ss:$0 sm:$0xff] (!%p1307_p7)  ;;  %v1546_v63 = vld [vmem:[%s1856_s5 + $0x10] sm:$0xff] (!%p1307_p7)   ;;  %v1541_v0 = vld [vmem:[%s1854_s3 + $0x28] sm:$0xff] (!%p1307_p7)  }
  0x28   : > { %1349 = vmatpush3.bf16.msra.mxu0 %v1514_v16  ;;  %v1547_v1 = vld [vmem:[%s1856_s5 + $0x18] sm:$0xff] (!%p1307_p7)   ;;  %v1542_v3 = vld [vmem:[%s1854_s3 + $0x30] sm:$0xff] (!%p1307_p7)   ;;  %v1548_v5 = vld [vmem:[%s1856_s5 + $0x20] sm:$0xff] (!%p1307_p7)  }
  0x29   : > { %1371 = vmatpush3.bf16.msra.mxu1 %v1515_v17  ;;  %1350 = vmatprep.subr.bf16.mxu0 %v1516_v18  ;;  %v1543_v6 = vld [vmem:[%s1854_s3 + $0x38] sm:$0xff] (!%p1307_p7)   ;;  %v1549_v8 = vld [vmem:[%s1856_s5 + $0x28] sm:$0xff] (!%p1307_p7)   ;;  %v1550_v10 = vld [vmem:[%s1856_s5 + $0x30] sm:$0xff] (!%p1307_p7)  }
  0x2a   : > { %1372 = vmatprep.subr.bf16.mxu1 %v1517_v19  ;;  %v1551_v11 = vld [vmem:[%s1856_s5 + $0x38] sm:$0xff] (!%p1307_p7)   ;;  %v1552_v12 = vld [vmem:[%s1858_s7] sm:$0xff] (!%p1307_p7)   ;;  %v1553_v13 = vld [vmem:[%s1858_s7 + $0x8] sm:$0xff] (!%p1307_p7)  }
  0x2b   : > { %v1554_v14 = vld [vmem:[%s1858_s7 + $0x10] sm:$0xff] (!%p1307_p7)   ;;  %v1555_v15 = vld [vmem:[%s1858_s7 + $0x18] sm:$0xff] (!%p1307_p7)   ;;  %v1556_v16 = vld [vmem:[%s1858_s7 + $0x20] sm:$0xff] (!%p1307_p7)  }
  0x2c   : > { %1351 = vmatpush3.bf16.msra.mxu0 %v1518_v20  ;;  %v1557_v17 = vld [vmem:[%s1858_s7 + $0x28] sm:$0xff] (!%p1307_p7)   ;;  %v1309_v18 = vld [vmem:[%s1855_s4] ss:$0 sm:$0xff] (!%p1307_p7) }
  0x2d   : > { %1373 = vmatpush3.bf16.msra.mxu1 %v1519_v21  ;;  %1352 = vmatprep.subr.bf16.mxu0 %v1520_v22 }
  0x2e   : > { %1374 = vmatprep.subr.bf16.mxu1 %v1521_v23 }
  0x30   : > { %1353 = vmatpush3.bf16.msra.mxu0 %v1522_v24 }
  0x31   : > { %1375 = vmatpush3.bf16.msra.mxu1 %v1523_v25  ;;  %1354 = vmatprep.subr.bf16.mxu0 %v1524_v26 }
  0x32   : > { %1376 = vmatprep.subr.bf16.mxu1 %v1525_v27  ;;  %v1558_v27 = vld [vmem:[%s1858_s7 + $0x30] sm:$0xff] (!%p1307_p7)  }
  0x34   : > { %1355 = vmatpush3.bf16.msra.mxu0 %v1526_v28  ;;  %v1559_v28 = vld [vmem:[%s1858_s7 + $0x38] sm:$0xff] (!%p1307_p7)  }
  0x35   : > { %1377 = vmatpush3.bf16.msra.mxu1 %v1527_v29  ;;  %1356 = vmatprep.subr.bf16.mxu0 %v1528_v30  ;;  %v1318_v29 = vld [vmem:[%s1857_s6] ss:$0 sm:$0xff] (!%p1307_p7) }
  0x36   : > { %1378 = vmatprep.subr.bf16.mxu1 %v1529_v31 }
  0x38   : > { %1357 = vmatpush3.bf16.msra.mxu0 %v1530_v32 }
  0x39   : > { %1379 = vmatpush3.bf16.msra.mxu1 %v1531_v33  ;;  %1413 = vmatprep.subr.bf16.mxu0 (!%p1307_p7), %v1589_v54 }
  0x3a   : > { %1433 = vmatprep.subr.bf16.mxu1 (!%p1307_p7), %v1589_v54 }
  0x3b   : > { %749 = vmatmul.mubr.bf16.vlgmr.msra.gmra.mrb[0].mxu0 %v1271_v36 }
  0x3c   : > { %789 = vmatmul.mubr.bf16.vlgmr.msra.gmra.mrb[0].mxu1 %v1273_v38  ;;  %1414 = vmatpush3.bf16.msra.mxu0 (!%p1307_p7), %v1536_v53  ;;  %v1327_v38 = vld [vmem:[%s1859_s8] ss:$0 sm:$0xff] (!%p1307_p7) }
  0x3d   : > { %1429 = vmatprep.mubr.msk.bf16.mxu0 (!%p1307_p7), %vm1590_vm0, %v1589_v54  ;;  %1415 = vmatprep.subr.bf16.mxu0 (!%p1307_p7), %v1589_v54 }
  0x3e   : > { %1449 = vmatprep.mubr.msk.bf16.mxu1 (!%p1307_p7), %vm1590_vm0, %v1589_v54  ;;  %1434 = vmatpush3.bf16.msra.mxu1 (!%p1307_p7), %v1544_v57 }
  0x3f   : > { %1435 = vmatprep.subr.bf16.mxu1 (!%p1307_p7), %v1589_v54 }
  0x40   : > { %1416 = vmatpush3.bf16.msra.mxu0 (!%p1307_p7), %v1537_v55 }
  0x41   : > { %1417 = vmatprep.subr.bf16.mxu0 (!%p1307_p7), %v1589_v54 }
  0x42   : > { %1436 = vmatpush3.bf16.msra.mxu1 (!%p1307_p7), %v1545_v59 }
  0x43   : > { %1437 = vmatprep.subr.bf16.mxu1 (!%p1307_p7), %v1589_v54 }
  0x44   : > { %1418 = vmatpush3.bf16.msra.mxu0 (!%p1307_p7), %v1538_v56 }
  0x45   : > { %1419 = vmatprep.subr.bf16.mxu0 (!%p1307_p7), %v1589_v54 }
  0x46   : > { %1438 = vmatpush3.bf16.msra.mxu1 (!%p1307_p7), %v1546_v63 }
  0x47   : > { %1439 = vmatprep.subr.bf16.mxu1 (!%p1307_p7), %v1589_v54 }
  0x48   : > { %1420 = vmatpush3.bf16.msra.mxu0 (!%p1307_p7), %v1539_v58 }
  0x49   : > { %1421 = vmatprep.subr.bf16.mxu0 (!%p1307_p7), %v1589_v54 }
  0x4a   : > { %1440 = vmatpush3.bf16.msra.mxu1 (!%p1307_p7), %v1547_v1 }
  0x4b   : > { %1441 = vmatprep.subr.bf16.mxu1 (!%p1307_p7), %v1589_v54 }
  0x4c   : > { %1422 = vmatpush3.bf16.msra.mxu0 (!%p1307_p7), %v1540_v60 }
  0x4d   : > { %1423 = vmatprep.subr.bf16.mxu0 (!%p1307_p7), %v1589_v54 }
  0x4e   : > { %1442 = vmatpush3.bf16.msra.mxu1 (!%p1307_p7), %v1548_v5 }
  0x4f   : > { %1443 = vmatprep.subr.bf16.mxu1 (!%p1307_p7), %v1589_v54 }
  0x50   : > { %1424 = vmatpush3.bf16.msra.mxu0 (!%p1307_p7), %v1541_v0 }
  0x51   : > { %1425 = vmatprep.subr.bf16.mxu0 (!%p1307_p7), %v1589_v54 }
  0x52   : > { %1444 = vmatpush3.bf16.msra.mxu1 (!%p1307_p7), %v1549_v8 }
  0x53   : > { %1445 = vmatprep.subr.bf16.mxu1 (!%p1307_p7), %v1589_v54 }
  0x54   : > { %1426 = vmatpush3.bf16.msra.mxu0 (!%p1307_p7), %v1542_v3 }
  0x55   : > { %1427 = vmatprep.subr.bf16.mxu0 (!%p1307_p7), %v1589_v54 }
  0x56   : > { %1446 = vmatpush3.bf16.msra.mxu1 (!%p1307_p7), %v1550_v10 }
  0x57   : > { %1447 = vmatprep.subr.bf16.mxu1 (!%p1307_p7), %v1589_v54 }
  0x58   : > { %1428 = vmatpush3.bf16.msra.mxu0 (!%p1307_p7), %v1543_v6 }
  0x59   : > { %1453 = vmatprep.subr.bf16.mxu0 (!%p1307_p7), %v1589_v54 }
  0x5a   : > { %1448 = vmatpush3.bf16.msra.mxu1 (!%p1307_p7), %v1551_v11 }
 0x10e   : > { %v1358_v40 = vpop.f32.mrb[0].mxu0 }
 0x10f   : > { %v1380_v41 = vpop.f32.mrb[0].mxu1  ;;  %v1359_v42 = vpop.f32.mrb[1].mxu0 }
 0x110   : > { %v1381_v43 = vpop.f32.mrb[1].mxu1  ;;  %v1360_v44 = vadd.f32 %v1359_v42, %v1358_v40  ;;  %v1361_v46 = vpop.f32.mrb[2].mxu0 }
 0x111   : > { %v1382_v45 = vadd.f32 %v1381_v43, %v1380_v41  ;;  %v1383_v47 = vpop.f32.mrb[2].mxu1  ;;  %v1362_v49 = vpop.f32.mrb[3].mxu0  ;;  %801 = sbr.rel (%p1307_p7) target bundleno = 1122 (0x462), region = 72 }
 0x112   : > { %v1384_v50 = vpop.f32.mrb[3].mxu1 }
 0x113   : > { %v791_v51 = vadd.f32 %v1382_v45, %v1360_v44  ;;  %v1336_v45 = vld [vmem:[%s1860_s9] ss:$0 sm:$0xff] (!%p1307_p7) }
 0x115   : > { %v796_v52 = vadd.f32 %v791_v51, %v443_v48  ;;  %v1337_v48 = vld [vmem:[#allocation3] ss:$0 sm:$0xff] (!%p1307_p7) }
 0x117   : > { %797 = vst [vmem:[#allocation2] sm:$0xff] %v796_v52 }
 0x11e   : > { %v802_v61 = vld [vmem:[#allocation2] sm:$0xff] }
 0x11f   : > { %v810_v2 = vadd.f32 %v1308_v62, %v802_v61 }
 0x121   : > { %v812_v4 = vmul.f32 0.2, %v810_v2  ;;  %vm811_vm1 = vcmp.gt.f32.partialorder %v810_v2, 0.0 }
 0x123   : > { %v813_v7 = vsel %vm811_vm1, %v810_v2, %v812_v4 }
 0x124   : > { %v814_v9 = vpack.c.bf16 %v813_v7, %v813_v7 }
 0x126   : > { %1430 = vmatmul.mubr.bf16.vlgmr.msra.gmra.mrb[0].mxu0 %v814_v9 }
 0x127   : > { %1469 = vmatprep.mubr.msk.bf16.mxu0 %vm1590_vm0, %v1589_v54  ;;  %1454 = vmatpush3.bf16.msra.mxu0 %v1552_v12 }
 0x128   : > { %1455 = vmatprep.subr.bf16.mxu0 %v1589_v54 }
 0x12b   : > { %1456 = vmatpush3.bf16.msra.mxu0 %v1553_v13 }
 0x12c   : > { %1457 = vmatprep.subr.bf16.mxu0 %v1589_v54 }
 0x12f   : > { %1458 = vmatpush3.bf16.msra.mxu0 %v1554_v14 }
 0x130   : > { %1459 = vmatprep.subr.bf16.mxu0 %v1589_v54 }
 0x133   : > { %1460 = vmatpush3.bf16.msra.mxu0 %v1555_v15 }
 0x134   : > { %1461 = vmatprep.subr.bf16.mxu0 %v1589_v54 }
 0x137   : > { %1462 = vmatpush3.bf16.msra.mxu0 %v1556_v16 }
 0x138   : > { %1463 = vmatprep.subr.bf16.mxu0 %v1589_v54 }
 0x13b   : > { %1464 = vmatpush3.bf16.msra.mxu0 %v1557_v17 }
 0x13c   : > { %1465 = vmatprep.subr.bf16.mxu0 %v1589_v54 }
 0x13f   : > { %1466 = vmatpush3.bf16.msra.mxu0 %v1558_v27 }
 0x140   : > { %1467 = vmatprep.subr.bf16.mxu0 %v1589_v54 }
 0x143   : > { %1468 = vmatpush3.bf16.msra.mxu0 %v1559_v28 }
 0x1f9   : > { %v920_v19 = vpop.f32.mrb[0].mxu0 }
 0x1fa   : > { %v921_v20 = vadd.f32 %v1309_v18, %v920_v19  ;;  %v1431_v21 = vpop.f32.mrb[1].mxu0 }
 0x1fb   : > { %v923_v22 = vpop.f32.mrb[2].mxu0 }
 0x1fc   : > { %vm926_vm2 = vcmp.gt.f32.partialorder %v921_v20, 0.0  ;;  %v927_v23 = vmul.f32 0.2, %v921_v20  ;;  %v1432_v24 = vpop.f32.mrb[3].mxu0 }
 0x1fe   : > { %v928_v25 = vsel %vm926_vm2, %v921_v20, %v927_v23 }
 0x1ff   : > { %v929_v26 = vpack.c.bf16 %v928_v25, %v928_v25 }
 0x201   : > { %1450 = vmatmul.mubr.bf16.vlgmr.msra.gmra.mrb[0].mxu1 %v929_v26 }
 0x2d4   : > { %v1035_v30 = vpop.f32.mrb[0].mxu1 }
 0x2d5   : > { %v1036_v31 = vadd.f32 %v1318_v29, %v1035_v30  ;;  %v1451_v32 = vpop.f32.mrb[1].mxu1 }
 0x2d6   : > { %v1038_v33 = vpop.f32.mrb[2].mxu1 }
 0x2d7   : > { %vm1041_vm3 = vcmp.gt.f32.partialorder %v1036_v31, 0.0  ;;  %v1042_v34 = vmul.f32 0.2, %v1036_v31  ;;  %v1452_v35 = vpop.f32.mrb[3].mxu1 }
 0x2d9   : > { %v1043_v36 = vsel %vm1041_vm3, %v1036_v31, %v1042_v34 }
 0x2da   : > { %v1044_v37 = vpack.c.bf16 %v1043_v36, %v1043_v36 }
 0x2dc   : > { %1470 = vmatmul.mubr.bf16.vlgmr.msra.gmra.mrb[4].mxu0 %v1044_v37 }
 0x3af   : > { %v1150_v39 = vpop.f32.mrb[4].mxu0 }
 0x3b0   : > { %v1151_v40 = vadd.f32 %v1327_v38, %v1150_v39  ;;  %v1471_v41 = vpop.f32.mrb[5].mxu0 }
 0x3b1   : > { %v1153_v42 = vpop.f32.mrb[6].mxu0 }
 0x3b2   : > { %v1157_v43 = vmul.f32 0.2, %v1151_v40  ;;  %v1472_v44 = vpop.f32.mrb[7].mxu0  ;;  %vm1156_vm4 = vcmp.gt.f32.partialorder %v1151_v40, 0.0 }
 0x3b4   : > { %v1158_v46 = vsel %vm1156_vm4, %v1151_v40, %v1157_v43 }
 0x3b5   : > { %v1166_v47 = vmul.f32 %v1336_v45, %v1158_v46 }
 0x3b7   : > { %1167 = vadd.xlane.f32.xlu0 %v1166_v47 }
 0x444   : > { %v1168_v49 = vpop.xlane.xlu0 %1167 }
 0x445   : > { %v1176_v50 = vadd.f32 %v1337_v48, %v1168_v49 }
 0x447   : > { %v1338_v51 = vmul.f32 -1.442695, %v1176_v50 }
 0x449   : > { %1560 = vpow2.f32 %v1338_v51 }
 0x453   : > { %v1561_v52 = vpop.eup %1560 }
 0x454   : > { %v1180_v53 = vadd.f32 1.0, %v1561_v52 }
 0x456   : > { %1562 = vrcp.f32 %v1180_v53 }
 0x460   : > { %v1563_v54 = vpop.eup %1562 }
 0x461   : > { %1184 = vst.msk [vmem:[%s1862_s11] sm:$0xff] %vm1183_vm5, %v1563_v54 }
 0x462 PF: > { %s23_s21 = sadd.s32 1, %s1586_s21   ;;  %s1863_s19 = smov %s1582_s20 }
 0x463   : > { %p20_p8 = scmp.ge.s32.totalorder %s23_s21, 4   ;;  %s1864_s20 = smov %s1866_s10 }
 0x465   :  { %22 = sbr.rel (!%p20_p8) target bundleno = 3 (0x3), region = 105 }

</bundles_post_ra>
